<compile_context>
chip_gen: v7x
topology: tpu7x:2x2x1
jax: 0.10.0
libtpu: 0.0.40
codegen_flags: <defaults>
</compile_context>

<pallas_src>
import functools

import jax
import jax.numpy as jnp
from jax.experimental import pallas as pl
from jax.experimental.pallas import tpu as pltpu

LN_EPS = 1e-5


def _round_up(x, m):
    return (x + m - 1) // m * m


def _layernorm(x, g, b):
    mu = jnp.mean(x, axis=-1, keepdims=True)
    var = jnp.mean((x - mu) ** 2, axis=-1, keepdims=True)
    return (x - mu) * jax.lax.rsqrt(var + LN_EPS) * g + b


def sgb_kernel(
    x_ref,       # (Bt*N, Din)   flattened tokens for Bt batch elements
    ln1_ref,     # (2, Din)      pre_norm gamma / beta
    wf_ref,      # (Din, Pf)     fused [to_qkv | proj_in] weight^T (zero-padded to Pf lanes)
    bf_ref,      # (1, Pf)       fused bias (zeros in the qkv / pad columns)
    wao_ref,     # (A, D2)       attn to_out weight^T (its bias is folded into bsp_ref)
    ln2_ref,     # (2, D2)       sgu_norm gamma / beta
    wsp_ref,     # (N, N)        proj_spatial (Conv1d k=1) weight
    bsp_ref,     # (N, D2)       proj_spatial bias + attn to_out bias (pre-combined)
    wout_ref,    # (D2, Dout)    proj_out weight^T
    bout_ref,    # (1, Dout)     proj_out bias
    o_ref,       # (Bt*N, Dout)
    *, bt, n, attn_dim, d2,
):
    x = x_ref[...]                                                      # (Bt*N, Din)

    # ---- pre_norm (LayerNorm over dim_in) ----
    xn = _layernorm(x, ln1_ref[0], ln1_ref[1])

    # ---- fused [to_qkv | proj_in]: one MXU push on a lane-aligned 128-wide RHS ----
    fused = jnp.dot(xn, wf_ref[...], preferred_element_type=jnp.float32) + bf_ref[0]
    a = attn_dim
    q = fused[:, 0 * a:1 * a]            # attention scale pre-folded into these columns
    k = fused[:, 1 * a:2 * a]
    va = fused[:, 2 * a:3 * a]
    u = fused[:, 3 * a:3 * a + d2]
    vg = fused[:, 3 * a + d2:3 * a + 2 * d2]

    # ---- single-head attention, batched over the Bt batch elements of this block ----
    q3 = q.reshape(bt, n, a)
    k3 = k.reshape(bt, n, a)
    va3 = va.reshape(bt, n, a)
    sim = jnp.einsum("bid,bjd->bij", q3, k3, preferred_element_type=jnp.float32)
    sim = sim - jnp.max(sim, axis=-1, keepdims=True)
    p = jnp.exp(sim)
    attn = p * pl.reciprocal(jnp.sum(p, axis=-1, keepdims=True), approx=True)
    ao = jnp.einsum("bij,bjd->bid", attn, va3, preferred_element_type=jnp.float32)
    attn_res = jnp.dot(ao.reshape(bt * n, a), wao_ref[...],
                       preferred_element_type=jnp.float32)              # (Bt*N, D2)

    # ---- spatial gating unit ----
    vn = _layernorm(vg, ln2_ref[0], ln2_ref[1])                         # (Bt*N, D2)
    vn3 = vn.reshape(bt, n, d2)
    wsp_b = jnp.broadcast_to(wsp_ref[...], (bt, n, n))
    vsp3 = jnp.einsum("bij,bjd->bid", wsp_b, vn3,
                      preferred_element_type=jnp.float32) + bsp_ref[...]
    vsp = vsp3.reshape(bt * n, d2) + attn_res                           # act_spatial = Identity

    # ---- proj_out + residual (drop_path = Identity, keep_prob == 1) ----
    out = jnp.dot(u * vsp, wout_ref[...], preferred_element_type=jnp.float32) + bout_ref[0]
    o_ref[...] = out + x


def pack_params(p, *, attn_dim, d2):
    """One-time host-side parameter transforms (fusion / scale-folding / lane padding)."""
    a = attn_dim
    scale = float(a) ** -0.5
    wq = p["wqkv_t"][:, :a] * scale                 # fold the attention scale into q columns
    wk = p["wqkv_t"][:, a:2 * a]
    wv = p["wqkv_t"][:, 2 * a:]
    wf = jnp.concatenate([wq, wk, wv, p["win_t"]], axis=1)              # (Din, 3A + Dinner)
    bf = jnp.concatenate([jnp.zeros((1, 3 * a), jnp.float32), p["bin"]], axis=1)
    pf = _round_up(wf.shape[1], 128)                # lane-align the fused RHS (zero padding)
    if pf != wf.shape[1]:
        wf = jnp.pad(wf, ((0, 0), (0, pf - wf.shape[1])))
        bf = jnp.pad(bf, ((0, 0), (0, pf - bf.shape[1])))
    return {
        "ln1": jnp.concatenate([p["ln1_g"], p["ln1_b"]], axis=0),       # (2, Din)
        "wf": wf, "bf": bf,
        "wao_t": p["wao_t"],
        "ln2": jnp.concatenate([p["ln2_g"], p["ln2_b"]], axis=0),       # (2, D2)
        "wsp": p["wsp"],
        "bsp": p["bsp"] + p["bao"],                 # (N,1)+(1,D2) -> (N,D2): fold attn bias
        "wout_t": p["wout_t"], "bout": p["bout"],
    }


def _pick_batch_tile(B, N, *, target_rows=128, min_grid=2):
    """Largest divisor Bt of B with Bt*N <= target_rows rows per MXU push, keeping at
    least `min_grid` grid steps when B allows (so both v7x TensorCores get work)."""
    cap = max(1, target_rows // max(N, 1))
    if B >= min_grid:
        cap = min(cap, max(1, B // min_grid))
    best = None
    for c in range(1, min(B, cap) + 1):
        if B % c == 0 and (c * N) % 8 == 0:         # keep the row block sublane-aligned
            best = c
    return best if best is not None else B          # full-array block is always legal


def spatial_gating_block(x, packed, *, attn_dim, d2, batch_tile=None):
    B, N, Din = x.shape
    Dout = packed["wout_t"].shape[1]
    Pf = packed["wf"].shape[1]
    bt = batch_tile or _pick_batch_tile(B, N)
    assert B % bt == 0
    rows = bt * N

    kernel = functools.partial(sgb_kernel, bt=bt, n=N, attn_dim=attn_dim, d2=d2)
    const = lambda shape: pl.BlockSpec(shape, lambda i: (0, 0))

    x2 = x.reshape(B * N, Din)                       # free metadata reshape outside the kernel

    out = pl.pallas_call(
        kernel,
        out_shape=jax.ShapeDtypeStruct((B * N, Dout), jnp.float32),
        grid_spec=pltpu.PrefetchScalarGridSpec(
            num_scalar_prefetch=0,
            grid=(B // bt,),
            in_specs=[
                pl.BlockSpec((rows, Din), lambda i: (i, 0)),   # x (flattened tokens)
                const((2, Din)),                               # pre_norm gamma/beta
                const((Din, Pf)), const((1, Pf)),              # fused [qkv|proj_in] W^T, bias
                const((attn_dim, d2)),                         # attn to_out W^T
                const((2, d2)),                                # sgu_norm gamma/beta
                const((N, N)), const((N, d2)),                 # proj_spatial W, fused bias
                const((d2, Dout)), const((1, Dout)),           # proj_out W^T, bias
            ],
            out_specs=pl.BlockSpec((rows, Dout), lambda i: (i, 0)),
        ),
        compiler_params=pltpu.CompilerParams(dimension_semantics=("parallel",)),
    )(
        x2,
        packed["ln1"], packed["wf"], packed["bf"], packed["wao_t"],
        packed["ln2"], packed["wsp"], packed["bsp"],
        packed["wout_t"], packed["bout"],
    )
    return out.reshape(B, N, Dout)


def reference(x, p, *, attn_dim, d2):
    """Pure-JAX reference mirroring the PyTorch forward, for correctness checking."""
    scale = float(attn_dim) ** -0.5
    xn = _layernorm(x, p["ln1_g"][0], p["ln1_b"][0])
    qkv = xn @ p["wqkv_t"]
    q, k, v = jnp.split(qkv, 3, axis=-1)
    sim = jnp.einsum("bid,bjd->bij", q, k) * scale
    attn = jax.nn.softmax(sim, axis=-1)
    ao = jnp.einsum("bij,bjd->bid", attn, v)
    attn_res = ao @ p["wao_t"] + p["bao"][0]
    h = xn @ p["win_t"] + p["bin"][0]
    u, vv = h[..., :d2], h[..., d2:]
    vn = _layernorm(vv, p["ln2_g"][0], p["ln2_b"][0])
    vsp = jnp.einsum("ij,bjd->bid", p["wsp"], vn) + p["bsp"][None]
    vsp = vsp + attn_res
    out = (u * vsp) @ p["wout_t"] + p["bout"][0]
    return out + x


if __name__ == "__main__":
    # Small shapes consistent with the module: tokens of dim 32, seq_len 8, batch 4
    # (B=4 exercises both batching-per-block and >=2 parallel grid steps).
    B, N, Din = 4, 8, 32
    mlp_ratio = 2
    Dinner = Din * mlp_ratio          # 64
    D2 = Dinner // 2                  # 32
    attn_dim = 16
    Dout = Din                        # dim_out defaults to dim_in (required for residual)

    key = jax.random.PRNGKey(0)
    ks = jax.random.split(key, 12)

    init_eps = 0.01 / N               # proj_spatial init: uniform(-init_eps, init_eps), bias = 1.0

    params = {
        "ln1_g": jnp.ones((1, Din), jnp.float32),
        "ln1_b": jnp.zeros((1, Din), jnp.float32),
        "wqkv_t": 0.05 * jax.random.normal(ks[0], (Din, 3 * attn_dim), jnp.float32),
        "wao_t": 0.05 * jax.random.normal(ks[1], (attn_dim, D2), jnp.float32),
        "bao": 0.01 * jax.random.normal(ks[2], (1, D2), jnp.float32),
        "win_t": 0.05 * jax.random.normal(ks[3], (Din, Dinner), jnp.float32),
        "bin": 0.01 * jax.random.normal(ks[4], (1, Dinner), jnp.float32),
        "ln2_g": jnp.ones((1, D2), jnp.float32),
        "ln2_b": jnp.zeros((1, D2), jnp.float32),
        "wsp": jax.random.uniform(ks[5], (N, N), jnp.float32, -init_eps, init_eps),
        "bsp": jnp.ones((N, 1), jnp.float32),
        "wout_t": 0.05 * jax.random.normal(ks[6], (D2, Dout), jnp.float32),
        "bout": 0.01 * jax.random.normal(ks[7], (1, Dout), jnp.float32),
    }

    x = jax.random.normal(ks[8], (B, N, Din), jnp.float32)

    packed = pack_params(params, attn_dim=attn_dim, d2=D2)   # one-time weight transforms
    y = spatial_gating_block(x, packed, attn_dim=attn_dim, d2=D2)
    y = jax.block_until_ready(y)

    y_ref = reference(x, params, attn_dim=attn_dim, d2=D2)
    assert y.shape == (B, N, Dout)
    assert jnp.allclose(y, y_ref, atol=1e-4, rtol=1e-4), "mismatch vs reference"

    print("KERNEL_OK")
</pallas_src>

<mosaic_0001>
module attributes {stable_mosaic.version = 11 : i64} {
  func.func @sgb_kernel(%arg0: i32, %arg1: memref<16x32xf32, #tpu.memory_space<vmem>>, %arg2: memref<2x32xf32, #tpu.memory_space<vmem>>, %arg3: memref<32x128xf32, #tpu.memory_space<vmem>>, %arg4: memref<1x128xf32, #tpu.memory_space<vmem>>, %arg5: memref<16x32xf32, #tpu.memory_space<vmem>>, %arg6: memref<2x32xf32, #tpu.memory_space<vmem>>, %arg7: memref<8x8xf32, #tpu.memory_space<vmem>>, %arg8: memref<8x32xf32, #tpu.memory_space<vmem>>, %arg9: memref<32x32xf32, #tpu.memory_space<vmem>>, %arg10: memref<1x32xf32, #tpu.memory_space<vmem>>, %arg11: memref<16x32xf32, #tpu.memory_space<vmem>>) attributes {dimension_semantics = [#tpu.dimension_semantics<parallel>], iteration_bounds = array<i64: 2>, scalar_prefetch = 0 : i64, scratch_operands = 0 : i64, tpu.core_type = #tpu.core_type<tc>, window_params = [{transform_indices = @transform_0, window_bounds = array<i64: 16, 32>}, {pipeline_mode = #tpu.pipeline_mode<synchronous>, transform_indices = @transform_1, window_bounds = array<i64: 2, 32>}, {pipeline_mode = #tpu.pipeline_mode<synchronous>, transform_indices = @transform_2, window_bounds = array<i64: 32, 128>}, {pipeline_mode = #tpu.pipeline_mode<synchronous>, transform_indices = @transform_3, window_bounds = array<i64: 1, 128>}, {pipeline_mode = #tpu.pipeline_mode<synchronous>, transform_indices = @transform_4, window_bounds = array<i64: 16, 32>}, {pipeline_mode = #tpu.pipeline_mode<synchronous>, transform_indices = @transform_5, window_bounds = array<i64: 2, 32>}, {pipeline_mode = #tpu.pipeline_mode<synchronous>, transform_indices = @transform_6, window_bounds = array<i64: 8, 8>}, {pipeline_mode = #tpu.pipeline_mode<synchronous>, transform_indices = @transform_7, window_bounds = array<i64: 8, 32>}, {pipeline_mode = #tpu.pipeline_mode<synchronous>, transform_indices = @transform_8, window_bounds = array<i64: 32, 32>}, {pipeline_mode = #tpu.pipeline_mode<synchronous>, transform_indices = @transform_9, window_bounds = array<i64: 1, 32>}, {transform_indices = @transform_10, window_bounds = array<i64: 16, 32>}]} {
    %c0 = arith.constant 0 : index
    %c0_0 = arith.constant 0 : index
    %0 = vector.load %arg1[%c0, %c0_0] : memref<16x32xf32, #tpu.memory_space<vmem>>, vector<16x32xf32>
    %c0_1 = arith.constant 0 : index
    %c0_2 = arith.constant 0 : index
    %1 = vector.load %arg2[%c0_1, %c0_2] : memref<2x32xf32, #tpu.memory_space<vmem>>, vector<1x32xf32>
    %2 = vector.shape_cast %1 : vector<1x32xf32> to vector<32xf32>
    %c1 = arith.constant 1 : index
    %c0_3 = arith.constant 0 : index
    %3 = vector.load %arg2[%c1, %c0_3] : memref<2x32xf32, #tpu.memory_space<vmem>>, vector<1x32xf32>
    %4 = vector.shape_cast %3 : vector<1x32xf32> to vector<32xf32>
    %cst = arith.constant dense<0.000000e+00> : vector<16xf32>
    %5 = vector.multi_reduction <add>, %0, %cst [1] : vector<16x32xf32> to vector<16xf32>
    %6 = vector.shape_cast %5 : vector<16xf32> to vector<16x1xf32>
    %cst_4 = arith.constant 3.200000e+01 : f32
    %7 = vector.broadcast %cst_4 : f32 to vector<16x1xf32>
    %8 = arith.divf %6, %7 : vector<16x1xf32>
    %9 = vector.broadcast %8 : vector<16x1xf32> to vector<16x32xf32>
    %10 = arith.subf %0, %9 : vector<16x32xf32>
    %11 = arith.mulf %10, %10 : vector<16x32xf32>
    %cst_5 = arith.constant dense<0.000000e+00> : vector<16xf32>
    %12 = vector.multi_reduction <add>, %11, %cst_5 [1] : vector<16x32xf32> to vector<16xf32>
    %13 = vector.shape_cast %12 : vector<16xf32> to vector<16x1xf32>
    %cst_6 = arith.constant 3.200000e+01 : f32
    %14 = vector.broadcast %cst_6 : f32 to vector<16x1xf32>
    %15 = arith.divf %13, %14 : vector<16x1xf32>
    %16 = vector.broadcast %8 : vector<16x1xf32> to vector<16x32xf32>
    %17 = arith.subf %0, %16 : vector<16x32xf32>
    %cst_7 = arith.constant 9.99999974E-6 : f32
    %18 = vector.broadcast %cst_7 : f32 to vector<16x1xf32>
    %19 = arith.addf %15, %18 : vector<16x1xf32>
    %20 = math.rsqrt %19 : vector<16x1xf32>
    %21 = vector.broadcast %20 : vector<16x1xf32> to vector<16x32xf32>
    %22 = arith.mulf %17, %21 : vector<16x32xf32>
    %23 = vector.shape_cast %2 : vector<32xf32> to vector<1x32xf32>
    %24 = vector.broadcast %23 : vector<1x32xf32> to vector<16x32xf32>
    %25 = arith.mulf %22, %24 : vector<16x32xf32>
    %26 = vector.shape_cast %4 : vector<32xf32> to vector<1x32xf32>
    %27 = vector.broadcast %26 : vector<1x32xf32> to vector<16x32xf32>
    %28 = arith.addf %25, %27 : vector<16x32xf32>
    %c0_8 = arith.constant 0 : index
    %c0_9 = arith.constant 0 : index
    %29 = vector.load %arg3[%c0_8, %c0_9] : memref<32x128xf32, #tpu.memory_space<vmem>>, vector<32x128xf32>
    %cst_10 = arith.constant dense<0.000000e+00> : vector<16x128xf32>
    %30 = tpu.matmul %28, %29, %cst_10 {dimension_numbers = #tpu.dot_dimension_numbers<[1], [0], [0], [1], [0, 0, 1, 1], [], []>} : vector<16x32xf32>, vector<32x128xf32>, vector<16x128xf32> -> vector<16x128xf32>
    %c0_11 = arith.constant 0 : index
    %c0_12 = arith.constant 0 : index
    %31 = vector.load %arg4[%c0_11, %c0_12] : memref<1x128xf32, #tpu.memory_space<vmem>>, vector<1x128xf32>
    %32 = vector.shape_cast %31 : vector<1x128xf32> to vector<128xf32>
    %33 = vector.shape_cast %32 : vector<128xf32> to vector<1x128xf32>
    %34 = vector.broadcast %33 : vector<1x128xf32> to vector<16x128xf32>
    %35 = arith.addf %30, %34 : vector<16x128xf32>
    %36 = vector.extract_strided_slice %35 {offsets = [0, 0], sizes = [16, 16], strides = [1, 1]} : vector<16x128xf32> to vector<16x16xf32>
    %37 = vector.extract_strided_slice %35 {offsets = [0, 16], sizes = [16, 16], strides = [1, 1]} : vector<16x128xf32> to vector<16x16xf32>
    %38 = vector.extract_strided_slice %35 {offsets = [0, 32], sizes = [16, 16], strides = [1, 1]} : vector<16x128xf32> to vector<16x16xf32>
    %39 = vector.extract_strided_slice %35 {offsets = [0, 48], sizes = [16, 32], strides = [1, 1]} : vector<16x128xf32> to vector<16x32xf32>
    %40 = vector.extract_strided_slice %35 {offsets = [0, 80], sizes = [16, 32], strides = [1, 1]} : vector<16x128xf32> to vector<16x32xf32>
    %41 = vector.shape_cast %36 : vector<16x16xf32> to vector<2x8x16xf32>
    %42 = vector.shape_cast %37 : vector<16x16xf32> to vector<2x8x16xf32>
    %43 = vector.shape_cast %38 : vector<16x16xf32> to vector<2x8x16xf32>
    "tpu.trace_start"() <{level = 10 : i32, message = "bid,bjd->bij"}> : () -> ()
    %cst_13 = arith.constant dense<0.000000e+00> : vector<2x8x8xf32>
    %44 = tpu.matmul %41, %42, %cst_13 {dimension_numbers = #tpu.dot_dimension_numbers<[2], [2], [1], [1], [0, 0, 0, 1, 1, 1], [0], [0]>} : vector<2x8x16xf32>, vector<2x8x16xf32>, vector<2x8x8xf32> -> vector<2x8x8xf32>
    "tpu.trace_stop"() : () -> ()
    %cst_14 = arith.constant dense<0xFF800000> : vector<2x8xf32>
    %45 = vector.multi_reduction <maximumf>, %44, %cst_14 [2] : vector<2x8x8xf32> to vector<2x8xf32>
    %46 = vector.shape_cast %45 : vector<2x8xf32> to vector<2x8x1xf32>
    %47 = vector.broadcast %46 : vector<2x8x1xf32> to vector<2x8x8xf32>
    %48 = arith.subf %44, %47 : vector<2x8x8xf32>
    %49 = math.exp %48 : vector<2x8x8xf32>
    %cst_15 = arith.constant dense<0.000000e+00> : vector<2x8xf32>
    %50 = vector.multi_reduction <add>, %49, %cst_15 [2] : vector<2x8x8xf32> to vector<2x8xf32>
    %51 = vector.shape_cast %50 : vector<2x8xf32> to vector<2x8x1xf32>
    %52 = tpu.reciprocal %51 {approx = true} : vector<2x8x1xf32> -> vector<2x8x1xf32>
    %53 = vector.broadcast %52 : vector<2x8x1xf32> to vector<2x8x8xf32>
    %54 = arith.mulf %49, %53 : vector<2x8x8xf32>
    "tpu.trace_start"() <{level = 10 : i32, message = "bij,bjd->bid"}> : () -> ()
    %cst_16 = arith.constant dense<0.000000e+00> : vector<2x8x16xf32>
    %55 = tpu.matmul %54, %43, %cst_16 {dimension_numbers = #tpu.dot_dimension_numbers<[2], [1], [1], [2], [0, 0, 0, 1, 1, 2], [0], [0]>} : vector<2x8x8xf32>, vector<2x8x16xf32>, vector<2x8x16xf32> -> vector<2x8x16xf32>
    "tpu.trace_stop"() : () -> ()
    %56 = vector.shape_cast %55 : vector<2x8x16xf32> to vector<16x16xf32>
    %c0_17 = arith.constant 0 : index
    %c0_18 = arith.constant 0 : index
    %57 = vector.load %arg5[%c0_17, %c0_18] : memref<16x32xf32, #tpu.memory_space<vmem>>, vector<16x32xf32>
    %cst_19 = arith.constant dense<0.000000e+00> : vector<16x32xf32>
    %58 = tpu.matmul %56, %57, %cst_19 {dimension_numbers = #tpu.dot_dimension_numbers<[1], [0], [0], [1], [0, 0, 1, 1], [], []>} : vector<16x16xf32>, vector<16x32xf32>, vector<16x32xf32> -> vector<16x32xf32>
    %c0_20 = arith.constant 0 : index
    %c0_21 = arith.constant 0 : index
    %59 = vector.load %arg6[%c0_20, %c0_21] : memref<2x32xf32, #tpu.memory_space<vmem>>, vector<1x32xf32>
    %60 = vector.shape_cast %59 : vector<1x32xf32> to vector<32xf32>
    %c1_22 = arith.constant 1 : index
    %c0_23 = arith.constant 0 : index
    %61 = vector.load %arg6[%c1_22, %c0_23] : memref<2x32xf32, #tpu.memory_space<vmem>>, vector<1x32xf32>
    %62 = vector.shape_cast %61 : vector<1x32xf32> to vector<32xf32>
    %cst_24 = arith.constant dense<0.000000e+00> : vector<16xf32>
    %63 = vector.multi_reduction <add>, %40, %cst_24 [1] : vector<16x32xf32> to vector<16xf32>
    %64 = vector.shape_cast %63 : vector<16xf32> to vector<16x1xf32>
    %cst_25 = arith.constant 3.200000e+01 : f32
    %65 = vector.broadcast %cst_25 : f32 to vector<16x1xf32>
    %66 = arith.divf %64, %65 : vector<16x1xf32>
    %67 = vector.broadcast %66 : vector<16x1xf32> to vector<16x32xf32>
    %68 = arith.subf %40, %67 : vector<16x32xf32>
    %69 = arith.mulf %68, %68 : vector<16x32xf32>
    %cst_26 = arith.constant dense<0.000000e+00> : vector<16xf32>
    %70 = vector.multi_reduction <add>, %69, %cst_26 [1] : vector<16x32xf32> to vector<16xf32>
    %71 = vector.shape_cast %70 : vector<16xf32> to vector<16x1xf32>
    %cst_27 = arith.constant 3.200000e+01 : f32
    %72 = vector.broadcast %cst_27 : f32 to vector<16x1xf32>
    %73 = arith.divf %71, %72 : vector<16x1xf32>
    %74 = vector.broadcast %66 : vector<16x1xf32> to vector<16x32xf32>
    %75 = arith.subf %40, %74 : vector<16x32xf32>
    %cst_28 = arith.constant 9.99999974E-6 : f32
    %76 = vector.broadcast %cst_28 : f32 to vector<16x1xf32>
    %77 = arith.addf %73, %76 : vector<16x1xf32>
    %78 = math.rsqrt %77 : vector<16x1xf32>
    %79 = vector.broadcast %78 : vector<16x1xf32> to vector<16x32xf32>
    %80 = arith.mulf %75, %79 : vector<16x32xf32>
    %81 = vector.shape_cast %60 : vector<32xf32> to vector<1x32xf32>
    %82 = vector.broadcast %81 : vector<1x32xf32> to vector<16x32xf32>
    %83 = arith.mulf %80, %82 : vector<16x32xf32>
    %84 = vector.shape_cast %62 : vector<32xf32> to vector<1x32xf32>
    %85 = vector.broadcast %84 : vector<1x32xf32> to vector<16x32xf32>
    %86 = arith.addf %83, %85 : vector<16x32xf32>
    %87 = vector.shape_cast %86 : vector<16x32xf32> to vector<2x8x32xf32>
    %c0_29 = arith.constant 0 : index
    %c0_30 = arith.constant 0 : index
    %88 = vector.load %arg7[%c0_29, %c0_30] : memref<8x8xf32, #tpu.memory_space<vmem>>, vector<8x8xf32>
    %89 = vector.shape_cast %88 : vector<8x8xf32> to vector<1x8x8xf32>
    %90 = vector.broadcast %89 : vector<1x8x8xf32> to vector<2x8x8xf32>
    "tpu.trace_start"() <{level = 10 : i32, message = "bij,bjd->bid"}> : () -> ()
    %cst_31 = arith.constant dense<0.000000e+00> : vector<2x8x32xf32>
    %91 = tpu.matmul %90, %87, %cst_31 {dimension_numbers = #tpu.dot_dimension_numbers<[2], [1], [1], [2], [0, 0, 0, 1, 1, 2], [0], [0]>} : vector<2x8x8xf32>, vector<2x8x32xf32>, vector<2x8x32xf32> -> vector<2x8x32xf32>
    "tpu.trace_stop"() : () -> ()
    %c0_32 = arith.constant 0 : index
    %c0_33 = arith.constant 0 : index
    %92 = vector.load %arg8[%c0_32, %c0_33] : memref<8x32xf32, #tpu.memory_space<vmem>>, vector<8x32xf32>
    %93 = vector.shape_cast %92 : vector<8x32xf32> to vector<1x8x32xf32>
    %94 = vector.broadcast %93 : vector<1x8x32xf32> to vector<2x8x32xf32>
    %95 = arith.addf %91, %94 : vector<2x8x32xf32>
    %96 = vector.shape_cast %95 : vector<2x8x32xf32> to vector<16x32xf32>
    %97 = arith.addf %96, %58 : vector<16x32xf32>
    %98 = arith.mulf %39, %97 : vector<16x32xf32>
    %c0_34 = arith.constant 0 : index
    %c0_35 = arith.constant 0 : index
    %99 = vector.load %arg9[%c0_34, %c0_35] : memref<32x32xf32, #tpu.memory_space<vmem>>, vector<32x32xf32>
    %cst_36 = arith.constant dense<0.000000e+00> : vector<16x32xf32>
    %100 = tpu.matmul %98, %99, %cst_36 {dimension_numbers = #tpu.dot_dimension_numbers<[1], [0], [0], [1], [0, 0, 1, 1], [], []>} : vector<16x32xf32>, vector<32x32xf32>, vector<16x32xf32> -> vector<16x32xf32>
    %c0_37 = arith.constant 0 : index
    %c0_38 = arith.constant 0 : index
    %101 = vector.load %arg10[%c0_37, %c0_38] : memref<1x32xf32, #tpu.memory_space<vmem>>, vector<1x32xf32>
    %102 = vector.shape_cast %101 : vector<1x32xf32> to vector<32xf32>
    %103 = vector.shape_cast %102 : vector<32xf32> to vector<1x32xf32>
    %104 = vector.broadcast %103 : vector<1x32xf32> to vector<16x32xf32>
    %105 = arith.addf %100, %104 : vector<16x32xf32>
    %106 = arith.addf %105, %0 : vector<16x32xf32>
    %c0_39 = arith.constant 0 : index
    %c0_40 = arith.constant 0 : index
    %107 = vector.load %arg11[%c0_39, %c0_40] : memref<16x32xf32, #tpu.memory_space<vmem>>, vector<16x32xf32>
    tpu.vector_store %arg11[%c0_39, %c0_40], %106 {strides = array<i32>} : memref<16x32xf32, #tpu.memory_space<vmem>>, vector<16x32xf32>,
    return
  }
  func.func @transform_0(%arg0: i32) -> (i32, i32) {
    %c0_i32 = arith.constant 0 : i32
    %c0_i32_0 = arith.constant 0 : i32
    return %arg0, %c0_i32 : i32, i32
  }
  func.func @transform_1(%arg0: i32) -> (i32, i32) {
    %c0_i32 = arith.constant 0 : i32
    %c0_i32_0 = arith.constant 0 : i32
    %c0_i32_1 = arith.constant 0 : i32
    return %c0_i32, %c0_i32_0 : i32, i32
  }
  func.func @transform_2(%arg0: i32) -> (i32, i32) {
    %c0_i32 = arith.constant 0 : i32
    %c0_i32_0 = arith.constant 0 : i32
    %c0_i32_1 = arith.constant 0 : i32
    return %c0_i32, %c0_i32_0 : i32, i32
  }
  func.func @transform_3(%arg0: i32) -> (i32, i32) {
    %c0_i32 = arith.constant 0 : i32
    %c0_i32_0 = arith.constant 0 : i32
    %c0_i32_1 = arith.constant 0 : i32
    return %c0_i32, %c0_i32_0 : i32, i32
  }
  func.func @transform_4(%arg0: i32) -> (i32, i32) {
    %c0_i32 = arith.constant 0 : i32
    %c0_i32_0 = arith.constant 0 : i32
    %c0_i32_1 = arith.constant 0 : i32
    return %c0_i32, %c0_i32_0 : i32, i32
  }
  func.func @transform_5(%arg0: i32) -> (i32, i32) {
    %c0_i32 = arith.constant 0 : i32
    %c0_i32_0 = arith.constant 0 : i32
    %c0_i32_1 = arith.constant 0 : i32
    return %c0_i32, %c0_i32_0 : i32, i32
  }
  func.func @transform_6(%arg0: i32) -> (i32, i32) {
    %c0_i32 = arith.constant 0 : i32
    %c0_i32_0 = arith.constant 0 : i32
    %c0_i32_1 = arith.constant 0 : i32
    return %c0_i32, %c0_i32_0 : i32, i32
  }
  func.func @transform_7(%arg0: i32) -> (i32, i32) {
    %c0_i32 = arith.constant 0 : i32
    %c0_i32_0 = arith.constant 0 : i32
    %c0_i32_1 = arith.constant 0 : i32
    return %c0_i32, %c0_i32_0 : i32, i32
  }
  func.func @transform_8(%arg0: i32) -> (i32, i32) {
    %c0_i32 = arith.constant 0 : i32
    %c0_i32_0 = arith.constant 0 : i32
    %c0_i32_1 = arith.constant 0 : i32
    return %c0_i32, %c0_i32_0 : i32, i32
  }
  func.func @transform_9(%arg0: i32) -> (i32, i32) {
    %c0_i32 = arith.constant 0 : i32
    %c0_i32_0 = arith.constant 0 : i32
    %c0_i32_1 = arith.constant 0 : i32
    return %c0_i32, %c0_i32_0 : i32, i32
  }
  func.func @transform_10(%arg0: i32) -> (i32, i32) {
    %c0_i32 = arith.constant 0 : i32
    %c0_i32_0 = arith.constant 0 : i32
    return %arg0, %c0_i32 : i32, i32
  }
}

</mosaic_0001>

<bundles_post_ra>
// kernel: tpu_custom_call.1
= control target key start
LH: loop header
LB: loop body
LE: loop exit
PB: predicated region body
PF: predicated region fallthrough
CT: control target
= control target key end

     0   :  { %s2475_s0 = inlined_call_operand.hbm [shape: f32[32,32], index: 0, kind: input, shape index: {}]   ;;  %s2476_s1 = inlined_call_operand.vmem [shape: f32[2,32], index: 1, kind: input, shape index: {}]   ;;  %s2477_s2 = inlined_call_operand.hbm [shape: f32[32,128], index: 2, kind: input, shape index: {}]   ;;  %s2478_s3 = inlined_call_operand.hbm [shape: f32[1,128], index: 3, kind: input, shape index: {}]   ;;  %s2479_s4 = inlined_call_operand.hbm [shape: f32[16,32], index: 4, kind: input, shape index: {}]   ;;  %s2480_s5 = inlined_call_operand.hbm [shape: f32[2,32], index: 5, kind: input, shape index: {}]   ;;  %s2481_s6 = inlined_call_operand.vmem [shape: f32[8,8], index: 6, kind: input, shape index: {}]   ;;  %s2482_s7 = inlined_call_operand.vmem [shape: f32[8,32], index: 7, kind: input, shape index: {}]   ;;  %s2483_s8 = inlined_call_operand.hbm [shape: f32[32,32], index: 8, kind: input, shape index: {}]   ;;  %s2484_s9 = inlined_call_operand.vmem [shape: f32[1,32], index: 9, kind: input, shape index: {}]   ;;  %s2485_s10 = inlined_call_operand.hbm [shape: f32[32,32], index: 10, kind: output, shape index: {}]  }
   0x1   :  { %2493 = sst [smem:[#allocation19_spill]] %s2477_s2 }
   0x2   :  { %2494 = sst [smem:[#allocation20_spill]] %s2484_s9 }
   0x3   :  { %2495 = sst [smem:[#allocation21_spill]] %s2485_s10 }
   0x4   :  { %15 = vsyncpa [#allocation3], 0 }
   0x5   :  { %17 = vsyncpa [#allocation3 + $0x1], 0 }
   0x6   :  { %18 = vsyncpa [#allocation6], 0 }
   0x7   :  { %19 = vsyncpa [#allocation9], 0 }
   0x8   :  { %20 = vsyncpa [#allocation12], 0 }
   0x9   :  { %21 = vsyncpa [#allocation4], 0 }
   0xa   :  { %23 = vsyncpa [#allocation4 + $0x1], 0  ;;  %s2058_s13 = smov 0   ;;  %s2060_s14 = smov 0  }
   0xb   :  { %s2062_s15 = smov 0   ;;  %s2064_s16 = smov 0  }
   0xc LB: > { %s1986_s17 = smov [#allocation5]   ;;  %s2079_s19 = sadd.s32 4294967295, %s1984_s16   ;;  %s1984_s16 = sphi %s2064_s16, %s2522_s16   ;;  %s1980_s15 = sphi %s2062_s15, %s2521_s15   ;;  %s1976_s14 = sphi %s2060_s14, %s2520_s14   ;;  %s1972_s13 = sphi %s2058_s13, %s2519_s13  }
   0xd   : > { %s290_s18 = sshll.u32 %s1986_s17, 4  ;;  %p1461_p0 = scmp.ge.s32.totalorder %s1984_s16, 1  ;;  %s2084_s18 = int_to_ptr.vmem [resolvable:$true] %s290_s18 }
   0xe   : > { %p2489_p1 = scmp.eq.s32.totalorder %s2079_s19, 0  ;;  %p275_p2 = scmp.lt.s32.totalorder %s1984_s16, 3 }
   0xf   : > { %s1987_s21 = smov [#allocation8]   ;;  %s1988_s24 = smov [#allocation7]  }
  0x10   : > { %p2086_p3 = pnand %p1461_p0, %p275_p2  ;;  %s314_s22 = sshll.u32 %s1987_s21, 4  ;;  %s2099_s22 = int_to_ptr.vmem [resolvable:$true] %s314_s22 }
  0x11   : > { %s304_s25 = sshll.u32 %s1988_s24, 4  ;;  %s2498_s2 = sld [smem:[#allocation19_spill]]  ;;  %s2101_s25 = int_to_ptr.vmem [resolvable:$true] %s304_s25 }
  0x12   : > { %s2496_s20 = scalar_select %p2086_p3, 1, 0 }
  0x13   : > { %p1637_p5 = pneg %p2086_p3 }
  0x15   : > { %p2095_p6 = pnand %p1637_p5, %p2489_p1 }
  0x17   : > { %s1736_s28 = scalar_lea.hbm %s2498_s2, 512  ;;  %p2111_p8 = pneg %p2095_p6 }
  0x18   : > { %p1737_p7 = scmp.ne.s32.totalorder %s2498_s2, %s1736_s28  ;;  %p1743_p11 = scmp.lt.u32.totalorder %s1736_s28, %s2498_s2 }
  0x1a   : > { %p1739_p9 = pnand %p2111_p8, %p1737_p7 }
  0x1c   : > { %p1740_p10 = pneg %p1739_p9 }
  0x1e   : > { %p1745_p12 = pnand %p1743_p11, %p1740_p10 }
  0x20   : > { %1748 = shalt.err (!%p1745_p12)
}
  0x21   : > { %s1749_s21 = scalar_lea.vmem %s2084_s18, 512  ;;  %p1757_p5 = scmp.lt.s32.totalorder %s2084_s18, %s2084_s18 }
  0x22   : > { %p1750_p13 = scmp.ne.s32.totalorder %s2084_s18, %s1749_s21  ;;  %p1758_p4 = scmp.lt.s32.totalorder %s1749_s21, %s1749_s21 }
  0x24   : > { %p1752_p0 = pnand %p1750_p13, %p2111_p8  ;;  %p1759_p7 = por %p1758_p4, %p1757_p5 }
  0x26   : > { %p1753_p2 = pneg %p1752_p0 }
  0x28   : > { %p1760_p9 = pnand %p1759_p7, %p1753_p2 }
  0x2a   : > { %1763 = shalt.err (!%p1760_p9)
}
  0x2b   : > { %s2487_s24 = smov 128   ;;  %s2491_s26 = smov 8  }
  0x2c   : > { %1640 = dma.hbm_to_vmem [thread:$0]  (!%p2095_p6), %s2498_s2, 512, %s2084_s18, [#allocation6], %s2487_s24, %s2487_s24, %s2491_s26  }
  0x2d   : > { %s1764_s12 = scalar_lea.hbm %s2479_s4, 256 }
  0x2e   : > { %p1765_p4 = scmp.ne.s32.totalorder %s2479_s4, %s1764_s12  ;;  %p1771_p12 = scmp.lt.u32.totalorder %s1764_s12, %s2479_s4 }
  0x30   : > { %p1767_p10 = pnand %p1765_p4, %p2111_p8 }
  0x32   : > { %p1768_p11 = pneg %p1767_p10 }
  0x34   : > { %p1773_p13 = pnand %p1771_p12, %p1768_p11 }
  0x36   : > { %1776 = shalt.err (!%p1773_p13)
}
  0x37   : > { %s1777_s18 = scalar_lea.vmem %s2099_s22, 256  ;;  %p1785_p7 = scmp.lt.s32.totalorder %s2099_s22, %s2099_s22 }
  0x38   : > { %p1778_p0 = scmp.ne.s32.totalorder %s2099_s22, %s1777_s18  ;;  %p1786_p9 = scmp.lt.s32.totalorder %s1777_s18, %s1777_s18 }
  0x3a   : > { %p1780_p2 = pnand %p1778_p0, %p2111_p8  ;;  %p1787_p4 = por %p1786_p9, %p1785_p7 }
  0x3c   : > { %p1781_p5 = pneg %p1780_p2 }
  0x3e   : > { %p1788_p10 = pnand %p1787_p4, %p1781_p5 }
  0x40   : > { %1791 = shalt.err (!%p1788_p10)
}
  0x41   : > { %1646 = dma.hbm_to_vmem [thread:$0]  (!%p2095_p6), %s2479_s4, 256, %s2099_s22, [#allocation9], %s2487_s24, %s2487_s24, %s2491_s26  }
  0x42   : > { %s1792_s29 = scalar_lea.hbm %s2478_s3, 16 }
  0x43   : > { %p1793_p11 = scmp.ne.s32.totalorder %s2478_s3, %s1792_s29  ;;  %p1799_p0 = scmp.lt.u32.totalorder %s1792_s29, %s2478_s3 }
  0x45   : > { %p1795_p12 = pnand %p1793_p11, %p2111_p8 }
  0x47   : > { %p1796_p13 = pneg %p1795_p12 }
  0x49   : > { %p1801_p2 = pnand %p1799_p0, %p1796_p13 }
  0x4b   : > { %1804 = shalt.err (!%p1801_p2)
}
  0x4c   : > { %s1805_s22 = scalar_lea.vmem %s2101_s25, 16  ;;  %s1812_s18 = scalar_lea.vmem %s2101_s25, 32 }
  0x4d   : > { %p1806_p5 = scmp.ne.s32.totalorder %s2101_s25, %s1805_s22  ;;  %p1813_p4 = scmp.lt.s32.totalorder %s2101_s25, %s2101_s25 }
  0x4e   : > { %p1814_p10 = scmp.lt.s32.totalorder %s1812_s18, %s1805_s22 }
  0x4f   : > { %p1808_p7 = pnand %p1806_p5, %p2111_p8 }
  0x50   : > { %p1815_p11 = por %p1814_p10, %p1813_p4 }
  0x51   : > { %p1809_p9 = pneg %p1808_p7 }
  0x53   : > { %p1816_p12 = pnand %p1815_p11, %p1809_p9 }
  0x55   : > { %1819 = shalt.err (!%p1816_p12)
}
  0x56   : > { %1643 = dma.hbm_to_vmem [thread:$0]  (!%p2095_p6), %s2478_s3, 16, %s2101_s25, [#allocation6]  }
  0x57   : > { %s1991_s27 = smov [#allocation10]   ;;  %s1992_s29 = smov [#allocation11]  }
  0x58   : > { %s328_s28 = sshll.u32 %s1991_s27, 4  ;;  %s344_s30 = sshll.u32 %s1992_s29, 4  ;;  %s329_s28 = int_to_ptr.vmem [resolvable:$true] %s328_s28  ;;  %s345_s30 = int_to_ptr.vmem [resolvable:$true] %s344_s30 }
  0x59   : > { %s1820_s21 = scalar_lea.hbm %s2480_s5, 32 }
  0x5a   : > { %p1821_p13 = scmp.ne.s32.totalorder %s2480_s5, %s1820_s21  ;;  %p1827_p5 = scmp.lt.u32.totalorder %s1820_s21, %s2480_s5 }
  0x5c   : > { %p1823_p0 = pnand %p1821_p13, %p2111_p8 }
  0x5e   : > { %p1824_p2 = pneg %p1823_p0 }
  0x60   : > { %p1829_p7 = pnand %p1827_p5, %p1824_p2 }
  0x62   : > { %1832 = shalt.err (!%p1829_p7)
}
  0x63   : > { %s1833_s25 = scalar_lea.vmem %s329_s28, 32  ;;  %p1841_p11 = scmp.lt.s32.totalorder %s329_s28, %s329_s28 }
  0x64   : > { %p1834_p9 = scmp.ne.s32.totalorder %s329_s28, %s1833_s25  ;;  %p1842_p12 = scmp.lt.s32.totalorder %s1833_s25, %s1833_s25 }
  0x66   : > { %p1836_p4 = pnand %p1834_p9, %p2111_p8  ;;  %p1843_p1 = por %p1842_p12, %p1841_p11 }
  0x68   : > { %p1837_p10 = pneg %p1836_p4 }
  0x6a   : > { %p1844_p3 = pnand %p1843_p1, %p1837_p10 }
  0x6c   : > { %1847 = shalt.err (!%p1844_p3)
}
  0x6d   : > { %1649 = dma.hbm_to_vmem [thread:$0]  (!%p2095_p6), %s2480_s5, 32, %s329_s28, [#allocation9]  }
  0x6e   : > { %s1848_s12 = scalar_lea.hbm %s2483_s8, 512 }
  0x6f   : > { %p1849_p13 = scmp.ne.s32.totalorder %s2483_s8, %s1848_s12  ;;  %p1855_p3 = scmp.lt.u32.totalorder %s1848_s12, %s2483_s8 }
  0x71   : > { %p1851_p0 = pnand %p1849_p13, %p2111_p8 }
  0x73   : > { %p1852_p1 = pneg %p1851_p0 }
  0x75   : > { %p1857_p2 = pnand %p1855_p3, %p1852_p1 }
  0x77   : > { %1860 = shalt.err (!%p1857_p2)
}
  0x78   : > { %s1861_s9 = scalar_lea.vmem %s345_s30, 512  ;;  %p1869_p4 = scmp.lt.s32.totalorder %s345_s30, %s345_s30 }
  0x79   : > { %p1862_p5 = scmp.ne.s32.totalorder %s345_s30, %s1861_s9  ;;  %p1870_p10 = scmp.lt.s32.totalorder %s1861_s9, %s1861_s9 }
  0x7b   : > { %p1864_p7 = pnand %p1862_p5, %p2111_p8  ;;  %p1871_p11 = por %p1870_p10, %p1869_p4 }
  0x7d   : > { %p1865_p9 = pneg %p1864_p7 }
  0x7f   : > { %p1872_p12 = pnand %p1871_p11, %p1865_p9 }
  0x81   : > { %1875 = shalt.err (!%p1872_p12)
}
  0x82   : > { %s2500_s28 = smov 128   ;;  %s1460_s23 = sadd.s32 4294967294, %s1984_s16  }
  0x83   : > { %1652 = dma.hbm_to_vmem [thread:$0]  (!%p2095_p6), %s2483_s8, 512, %s345_s30, [#allocation12], %s2500_s28, %s2500_s28, %s2491_s26  }
  0x84   : > { %s2226_s11 = sadd.s32 1, %s1984_s16   ;;  %s36_s27 = sadd.s32 1, %s1980_s15 }
  0x85   : > { %s33_s24 = ssub.s32 %s1984_s16, %s2226_s11  ;;  %p43_p8 = scmp.ne.s32.totalorder %s1980_s15, %s1976_s14 }
  0x86   : > { %p34_p13 = scmp.eq.s32.totalorder %s33_s24, 0  ;;  %p44_p0 = scmp.eq.s32.totalorder %s1984_s16, 0 }
  0x87   : > { %p49_p1 = scmp.ne.s32.totalorder %s1976_s14, %s1972_s13  ;;  %p262_p3 = scmp.eq.s32.totalorder %s2079_s19, 1 }
  0x88   : > { %s2238_s29 = scalar_select %p34_p13, %s1980_s15, %s36_s27  }
  0x89   : > { %p45_p2 = por %p44_p0, %p43_p8  ;;  %p2501_p5 = scmp.eq.s32.totalorder %s2079_s19, 0 }
  0x8a   : > { %p2246_p6 = por %p262_p3, %p43_p8  ;;  %p268_p9 = scmp.eq.s32.totalorder %s1460_s23, 1 }
  0x8b   : > { %p2242_p7 = por %p2501_p5, %p49_p1  ;;  %p1666_p4 = scmp.lt.s32.totalorder %s1984_s16, 2 }
  0x8c   : > { %s2503_s30 = scalar_select %p2246_p6, 1, 0 }
  0x8d   : > { %s361_s17 = sand.u32 1, %s1980_s15   ;;  %p2252_p10 = por %p268_p9, %p49_p1 }
  0x8e   : > { %s1468_s22 = sshll.u32 %s361_s17, 4  ;;  %s1504_s18 = sshll.u32 %s1984_s16, 8 }
  0x8f   : > { %s2504_s21 = scalar_select %p2252_p10, 1, 0 }
  0x90   : > { %s2260_s10 = scalar_lea.hbm %s2475_s0, %s1504_s18  ;;  %s365_s27 = scalar_lea.vmem [#allocation2], %s1468_s22 }
  0x91   : > { %s372_s24 = sshll.u32 %s365_s27, 4  ;;  %p2262_p11 = pnand %p1666_p4, %p45_p2  ;;  %s2266_s24 = int_to_ptr.vmem [resolvable:$true] %s372_s24 }
  0x92   : > { %s2268_s26 = scalar_lea.sflag [#allocation3], %s361_s17  ;;  %s1876_s2 = scalar_lea.hbm %s2260_s10, 256 }
  0x93   : > { %p1877_p12 = scmp.ne.s32.totalorder %s2260_s10, %s1876_s2  ;;  %p1878_p8 = pneg %p2262_p11 }
  0x94   : > { %s1881_s9 = scalar_lea.hbm %s2475_s0, 512  ;;  %p1882_p1 = scmp.lt.u32.totalorder %s2260_s10, %s2475_s0 }
  0x95   : > { %p1879_p13 = pnand %p1878_p8, %p1877_p12  ;;  %p1883_p3 = scmp.lt.u32.totalorder %s1881_s9, %s1876_s2 }
  0x96   : > { %p1885_p5 = scmp.lt.u32.totalorder %s1876_s2, %s2260_s10 }
  0x97   : > { %p1880_p0 = pneg %p1879_p13  ;;  %p1884_p2 = por %p1883_p3, %p1882_p1 }
  0x99   : > { %p1886_p9 = por %p1885_p5, %p1884_p2 }
  0x9b   : > { %p1887_p4 = pnand %p1886_p9, %p1880_p0 }
  0x9d   : > { %1890 = shalt.err (!%p1887_p4)
}
  0x9e   : > { %s1891_s17 = scalar_lea.vmem %s2266_s24, 256  ;;  %s1993_s22 = smov [#allocation2]  }
  0x9f   : > { %p1892_p12 = scmp.ne.s32.totalorder %s2266_s24, %s1891_s17  ;;  %s1896_s18 = sshll.u32 %s1993_s22, 4  ;;  %s1897_s18 = int_to_ptr.vmem [resolvable:$false] %s1896_s18 }
  0xa0   : > { %s1898_s25 = scalar_lea.vmem %s1897_s18, 512  ;;  %p1899_p6 = scmp.lt.s32.totalorder %s2266_s24, %s1897_s18 }
  0xa1   : > { %p1894_p13 = pnand %p1892_p12, %p1878_p8  ;;  %p1900_p1 = scmp.lt.s32.totalorder %s1898_s25, %s1891_s17 }
  0xa3   : > { %p1895_p10 = pneg %p1894_p13  ;;  %p1901_p3 = por %p1900_p1, %p1899_p6 }
  0xa5   : > { %p1902_p2 = pnand %p1901_p3, %p1895_p10 }
  0xa7   : > { %1905 = shalt.err (!%p1902_p2)
}
  0xa8   : > { %s2506_s2 = smov 8   ;;  %p2507_p8 = scmp.ne.s32.totalorder %s2496_s20, 0 }
  0xa9   : > { %1656 = dma.hbm_to_vmem [thread:$0]  (!%p2262_p11), %s2260_s10, 256, %s2266_s24, %s2268_s26, %s2500_s28, %s2500_s28, %s2506_s2  }
  0xaa   : > { %384 = sbr.rel (%p2507_p8) target bundleno = 2430 (0x97e), region = 60  ;;  %s2302_s9 = sand.u32 (!%p2507_p8), 1, %s1976_s14  }
  0xab   : > { %s1472_s27 = sshll.u32 (!%p2507_p8), %s2302_s9, 4  ;;  %s387_s17 = scalar_lea.sflag (!%p2507_p8), [#allocation3], %s2302_s9 }
  0xac   : > { %s390_s23 = scalar_lea.vmem (!%p2507_p8), [#allocation2], %s1472_s27 }
  0xb1   : > { %1951 = dma.done.wait (%p2242_p7), %s387_s17, 256  }
  0xb2   : > { %1953 = vsyncadd (%p2242_p7), %s387_s17, 4294967040  ;;  %p2508_p6 = scmp.eq.s32.totalorder %s2079_s19, 0 }
  0xb4   : > { %1955 = dma.done.wait (%p2508_p6), [#allocation6], 528   ;;  %p2509_p10 = pmov %p2508_p6 }
  0xb5   : > { %p2510_p11 = pmov %p2508_p6 }
  0xb6   : > { %1957 = vsyncadd (%p2509_p10), [#allocation6], 4294966768 }
  0xb7   : > { %1959 = dma.done.wait (%p2510_p11), [#allocation9], 288   ;;  %p2511_p0 = pmov %p2508_p6 }
  0xb9   : > { %1961 = vsyncadd (%p2511_p0), [#allocation9], 4294967008  ;;  %p2512_p5 = pmov %p2511_p0 }
  0xba   : > { %p2513_p9 = pmov %p2511_p0 }
  0xbb   : > { %1963 = dma.done.wait (%p2512_p5), [#allocation12], 512  }
  0xbc   : > { %1965 = vsyncadd (%p2513_p9), [#allocation12], 4294966784  ;;  %vm453_vm0 = vcmask 261120   ;;  %v2324_v0 = vld [vmem:[%s390_s23] sm:$0xff]  ;;  %v2326_v1 = vld [vmem:[%s390_s23 + $0x8] sm:$0xff]  ;;  %v1994_v36 = vmov 0.0  }
  0xbd   : > { %v454_v2 = vsel %vm453_vm0, %v2324_v0, 0.0  ;;  %v457_v3 = vsel %vm453_vm0, %v2326_v1, 0.0  ;;  %v493_v14 = vld [vmem:[#allocation5] sm:$0xff]  ;;  %v494_v15 = vld [vmem:[#allocation5 + $0x8] sm:$0xff]  ;;  %v495_v16 = vld [vmem:[#allocation5 + $0x10] sm:$0xff]  ;;  %1545 = vmatprep.subr.mxu1 %v1994_v36  ;;  %vm1995_vm1 = vmmov 0  }
  0xbe   : > { %455 = vadd.xlane.f32.xlu0 %v454_v2  ;;  %v1593_v17 = vpack.c.bf16 %v494_v15, %v493_v14  ;;  %v496_v18 = vld [vmem:[#allocation5 + $0x18] sm:$0xff]  ;;  %v1479_v27 = vld [vmem:[%s2476_s1] ss:$0 sm:$0xff]  ;;  %v1480_v29 = vld [vmem:[%s2476_s1 + $0x1] ss:$0 sm:$0xff]  ;;  %1547 = vmatprep.mubr.msk.f32.mxu1 %vm1995_vm1, %v1994_v36  ;;  %s1996_s10 = smov 112  }
  0xbf   : > { %v1597_v19 = vpack.c.bf16 %v496_v18, %v495_v16  ;;  %v1481_v37 = vld [vmem:[#allocation7] ss:$0 sm:$0xff]  ;;  %vm588_vm2 = vcmask 130048   ;;  %vm740_vm3 = vcmask 64512   ;;  %s1997_s24 = smov 48   ;;  %s1998_s22 = smov 96  }
  0xc0   : > { %1594 = vmatprep.subr.bf16.mxu0 %v1593_v17  ;;  %v915_v18 = vld [vmem:[#allocation8] sm:$0xff]  ;;  %s1999_s18 = smov 80   ;;  %s2514_s28 = sld [smem:[#allocation20_spill]] }
  0xc1   : > { %1596 = vmatpush3.bf16.msra.mxu0 %v1593_v17  ;;  %s1505_s12 = sshll.u32 %s2079_s19, 8  ;;  %s2515_s25 = sld [smem:[#allocation21_spill]] }
  0xc2   : > { %458 = vadd.xlane.f32.xlu0 %v457_v3  ;;  %1598 = vmatprep.subr.bf16.mxu0 %v1597_v19  ;;  %s1326_s19 = scalar_lea.sflag [#allocation4], %s2302_s9  ;;  %p2516_p4 = scmp.ne.s32.totalorder %s2503_s30, 0 }
  0xc3   : > { %s2000_s17 = smov [#allocation13]  }
  0xc4   : > { %s1910_s23 = sshll.u32 %s2000_s17, 4  ;;  %s1911_s23 = int_to_ptr.vmem [resolvable:$false] %s1910_s23 }
  0xc5   : > { %1600 = vmatpush3.bf16.msra.mxu0 %v1597_v19  ;;  %v916_v19 = vld [vmem:[#allocation8 + $0x8] sm:$0xff]  ;;  %s1912_s20 = scalar_lea.vmem %s1911_s23, 512 }
  0xc6   : > { %1555 = vmatprep.subr.mxu0 %v1994_v36 }
  0xc7   : > { %s2426_s2 = scalar_lea.hbm %s2515_s25, %s1505_s12 }
 0x14b   : > { %v456_v4 = vpop.xlane.xlu0 %455 }
 0x14c   : > { %v461_v5 = vmul.f32 0.03125, %v456_v4 }
 0x14e   : > { %v463_v6 = vsub.f32 %v2324_v0, %v461_v5 }
 0x14f   : > { %v459_v7 = vpop.xlane.xlu0 %458 }
 0x150   : > { %v462_v8 = vmul.f32 0.03125, %v459_v7  ;;  %v465_v9 = vmul.f32 %v463_v6, %v463_v6 }
 0x152   : > { %v464_v10 = vsub.f32 %v2326_v1, %v462_v8  ;;  %v467_v11 = vsel %vm453_vm0, %v465_v9, 0.0 }
 0x153   : > { %468 = vadd.xlane.f32.xlu1 %v467_v11 }
 0x154   : > { %v466_v12 = vmul.f32 %v464_v10, %v464_v10 }
 0x156   : > { %v470_v13 = vsel %vm453_vm0, %v466_v12, 0.0 }
 0x157   : > { %471 = vadd.xlane.f32.xlu1 %v470_v13 }
 0x1e0   : > { %v469_v20 = vpop.xlane.xlu1 %468 }
 0x1e1   : > { %v473_v21 = vmul.f32 0.03125, %v469_v20  ;;  %v1601_v20 = vpack.c.bf16 %v916_v19, %v915_v18 }
 0x1e3   : > { %v475_v22 = vadd.f32 1e-05, %v473_v21 }
 0x1e4   : > { %v472_v23 = vpop.xlane.xlu1 %471 }
 0x1e5   : > { %1720 = vrsqrt.f32 %v475_v22  ;;  %v474_v24 = vmul.f32 0.03125, %v472_v23 }
 0x1e7   : > { %v476_v25 = vadd.f32 1e-05, %v474_v24 }
 0x1e9   : > { %1722 = vrsqrt.f32 %v476_v25  ;;  %v1493_v25 = vld [vmem:[#allocation10 + $0x1] ss:$0 sm:$0xff] }
 0x1ef   : > { %v1721_v26 = vpop.eup %1720 }
 0x1f0   : > { %v479_v28 = vmul.f32 %v1721_v26, %v463_v6  ;;  %v1492_v26 = vld [vmem:[#allocation10] ss:$0 sm:$0xff] }
 0x1f2   : > { %v485_v30 = vmul.f32 %v1479_v27, %v479_v28 }
 0x1f3   : > { %v1723_v31 = vpop.eup %1722 }
 0x1f4   : > { %v480_v32 = vmul.f32 %v1723_v31, %v464_v10  ;;  %v491_v33 = vadd.f32 %v1480_v29, %v485_v30 }
 0x1f6   : > { %v486_v34 = vmul.f32 %v1479_v27, %v480_v32  ;;  %1542 = vmatprep.mubr.msk.f32.mxu0 %vm453_vm0, %v491_v33 }
 0x1f8   : > { %v492_v35 = vadd.f32 %v1480_v29, %v486_v34 }
 0x1fa   : > { %1543 = vmatmul.mubr.msk.f32.vlgmr.msra.gmra.mrb[0].mxu0 %vm453_vm0, %v492_v35 }
 0x1fb   : > { %1557 = vmatprep.mubr.msk.f32.mxu0 %vm1995_vm1, %v1994_v36 }
 0x2cd   : > { %v1544_v38 = vpop.f32.mrb[0].mxu0 }
 0x2ce   : > { %v2350_v39 = vadd.f32 %v1544_v38, %v1481_v37  ;;  %v576_v40 = vpop.f32.mrb[1].mxu0 }
 0x2cf   : > { %v2352_v41 = vadd.f32 %v1481_v37, %v576_v40 }
 0x2d0   : > { %664 = vrot.lane.b32.xlu1 %v2350_v39, %s1996_s10 }
 0x2d1   : > { %586 = vrot.lane.b32.xlu0 %v2352_v41, %s1996_s10  ;;  %s446_s10 = scalar_lea.vmem [#allocation13], %s1472_s27 }
 0x342   : > { %v665_v43 = vpop.permute.xlu1 %664 }
 0x343   : > { %v587_v42 = vpop.permute.xlu0 %586 }
 0x344   : > { %1546 = vmatpush3.xpose.msk.msra.mxu1 %vm588_vm2, %v587_v42 }
 0x345   : > { %1550 = vmatprep.subr.mxu1 %v1994_v36 }
 0x347   : > { %1548 = vmatmul.mubr.msk.f32.vlgmr.msra.gmra.mrb[0].mxu1 %vm588_vm2, %v2352_v41 }
 0x348   : > { %1551 = vmatpush3.xpose.msk.msra.mxu1 %vm588_vm2, %v665_v43  ;;  %1552 = vmatprep.mubr.msk.f32.mxu1 %vm1995_vm1, %v1994_v36 }
 0x349   : > { %1560 = vmatprep.subr.mxu1 %v1994_v36 }
 0x34b   : > { %1553 = vmatmul.mubr.msk.f32.vlgmr.msra.gmra.mrb[2].mxu1 %vm588_vm2, %v2350_v39 }
 0x34c   : > { %1562 = vmatprep.mubr.msk.f32.mxu1 %vm1995_vm1, %v1994_v36 }
 0x41a   : > { %v659_v44 = vpop.f32.mrb[0].mxu1 }
 0x41b   : > { %v1549_v45 = vpop.f32.mrb[1].mxu1  ;;  %v741_v46 = vsel %vm740_vm3, %v659_v44, -inf }
 0x41c   : > { %742 = vmax.xlane.f32.xlu1 %v741_v46 }
 0x41e   : > { %v736_v47 = vpop.f32.mrb[2].mxu1 }
 0x41f   : > { %v1554_v48 = vpop.f32.mrb[3].mxu1  ;;  %v744_v49 = vsel %vm740_vm3, %v736_v47, -inf }
 0x420   : > { %745 = vmax.xlane.f32.xlu0 %v744_v49  ;;  %v1060_v49 = vld [vmem:[%s2481_s6] sm:$0xff] }
 0x42d   : > { %1002 = vrot.lane.b32.xlu1 %v2350_v39, %s1997_s24 }
 0x436   : > { %1000 = vrot.lane.b32.xlu0 %v2352_v41, %s1997_s24 }
 0x4a9   : > { %v743_v50 = vpop.xlane.xlu1 %742 }
 0x4aa   : > { %v747_v51 = vsub.f32 %v659_v44, %v743_v50 }
 0x4ac   : > { %v749_v52 = vmul.f32 1.442695, %v747_v51 }
 0x4ad   : > { %v1003_v53 = vpop.permute.xlu1 %1002  ;;  %v746_v54 = vpop.xlane.xlu0 %745 }
 0x4ae   : > { %1724 = vpow2.f32 %v749_v52  ;;  %v748_v55 = vsub.f32 %v736_v47, %v746_v54  ;;  %v1009_v56 = vsel %vm453_vm0, %v1003_v53, 0.0  ;;  %v1061_v54 = vld [vmem:[%s2482_s7] sm:$0xff] }
 0x4af   : > { %1010 = vadd.xlane.f32.xlu1 %v1009_v56  ;;  %v1226_v56 = vld [vmem:[#allocation11 + $0x8] sm:$0xff] }
 0x4b0   : > { %v751_v57 = vmul.f32 1.442695, %v748_v55  ;;  %v1225_v55 = vld [vmem:[#allocation11] sm:$0xff] }
 0x4b1   : > { %v1001_v58 = vpop.permute.xlu0 %1000 }
 0x4b2   : > { %1726 = vpow2.f32 %v751_v57  ;;  %v1006_v59 = vsel %vm453_vm0, %v1001_v58, 0.0  ;;  %v1605_v57 = vpack.c.bf16 %v1226_v56, %v1225_v55 }
 0x4b3   : > { %1007 = vadd.xlane.f32.xlu0 %v1006_v59 }
 0x4b8   : > { %v1725_v60 = vpop.eup %1724 }
 0x4b9   : > { %v753_v61 = vsel %vm740_vm3, %v1725_v60, 0.0 }
 0x4ba   : > { %754 = vadd.xlane.f32.xlu1 %v753_v61 }
 0x4bc   : > { %v1727_v62 = vpop.eup %1726 }
 0x4bd   : > { %v756_v63 = vsel %vm740_vm3, %v1727_v62, 0.0 }
 0x4be   : > { %757 = vadd.xlane.f32.xlu0 %v756_v63 }
 0x4cb   : > { %839 = vrot.lane.b32.xlu1 %v2350_v39, %s1998_s22 }
 0x4d4   : > { %763 = vrot.lane.b32.xlu0 %v2352_v41, %s1998_s22 }
 0x53c   : > { %v1011_v2 = vpop.xlane.xlu1 %1010 }
 0x53d   : > { %v1013_v4 = vmul.f32 0.03125, %v1011_v2 }
 0x53f   : > { %v1015_v7 = vsub.f32 %v2350_v39, %v1013_v4  ;;  %v1227_v4 = vld [vmem:[#allocation11 + $0x10] sm:$0xff] }
 0x540   : > { %v1008_v3 = vpop.xlane.xlu0 %1007 }
 0x541   : > { %v1012_v5 = vmul.f32 0.03125, %v1008_v3  ;;  %v1017_v10 = vmul.f32 %v1015_v7, %v1015_v7 }
 0x543   : > { %v1014_v6 = vsub.f32 %v2352_v41, %v1012_v5  ;;  %v1228_v5 = vld [vmem:[#allocation11 + $0x18] sm:$0xff] }
 0x545   : > { %v1016_v8 = vmul.f32 %v1014_v6, %v1014_v6 }
 0x547   : > { %v755_v9 = vpop.xlane.xlu1 %754  ;;  %1020 = vrot.lane.b32.xlu1 %v1016_v8, %s1997_s24 }
 0x548   : > { %1728 = vrcp.f32 %v755_v9 }
 0x54b   : > { %v840_v11 = vpop.permute.xlu1 %839  ;;  %1022 = vrot.lane.b32.xlu1 %v1017_v10, %s1997_s24  ;;  %v758_v12 = vpop.xlane.xlu0 %757 }
 0x54c   : > { %1730 = vrcp.f32 %v758_v12  ;;  %1561 = vmatpush3.msra.mxu1 %v840_v11 }
 0x54d   : > { %1572 = vmatprep.subr.mxu1 %v1994_v36 }
 0x54f   : > { %v764_v13 = vpop.permute.xlu0 %763 }
 0x550   : > { %1556 = vmatpush3.msra.mxu0 %v764_v13  ;;  %v1496_v13 = vld [vmem:[%s2514_s28] ss:$0 sm:$0xff] }
 0x551   : > { %1602 = vmatprep.subr.bf16.mxu0 %v1601_v20 }
 0x552   : > { %v1729_v14 = vpop.eup %1728 }
 0x553   : > { %v761_v15 = vmul.f32 %v1729_v14, %v1725_v60 }
 0x555   : > { %1558 = vmatmul.mubr.msk.f32.vlgmr.msra.gmra.mrb[2].mxu0 %vm740_vm3, %v761_v15 }
 0x556   : > { %v1731_v16 = vpop.eup %1730  ;;  %1604 = vmatpush3.bf16.msra.mxu0 %v1601_v20 }
 0x557   : > { %v762_v17 = vmul.f32 %v1731_v16, %v1727_v62  ;;  %1577 = vmatprep.subr.mxu0 %v1994_v36 }
 0x559   : > { %1563 = vmatmul.mubr.msk.f32.vlgmr.msra.gmra.mrb[4].mxu1 %vm740_vm3, %v762_v17 }
 0x55a   : > { %1574 = vmatprep.mubr.msk.f32.mxu1 %vm1995_vm1, %v1994_v36 }
 0x5b9   : > { %v1021_v21 = vpop.permute.xlu1 %1020 }
 0x5ba   : > { %v1026_v22 = vsel %vm453_vm0, %v1021_v21, 0.0 }
 0x5bb   : > { %1027 = vadd.xlane.f32.xlu0 %v1026_v22 }
 0x5bd   : > { %v1023_v23 = vpop.permute.xlu1 %1022 }
 0x5be   : > { %v1029_v24 = vsel %vm453_vm0, %v1023_v23, 0.0 }
 0x5bf   : > { %1030 = vadd.xlane.f32.xlu1 %v1029_v24 }
 0x5d0   : > { %1055 = vrot.lane.b32.xlu1 %v1493_v25, %s1999_s18 }
 0x5d1   : > { %1045 = vrot.lane.b32.xlu0 %v1492_v26, %s1999_s18 }
 0x628   : > { %v835_v27 = vpop.f32.mrb[2].mxu0 }
 0x629   : > { %v1559_v28 = vpop.f32.mrb[3].mxu0  ;;  %1569 = vmatprep.mubr.msk.f32.mxu0 %vm588_vm2, %v835_v27 }
 0x62c   : > { %v911_v29 = vpop.f32.mrb[4].mxu1 }
 0x62d   : > { %v1564_v30 = vpop.f32.mrb[5].mxu1  ;;  %1570 = vmatmul.mubr.msk.f32.vlgmr.msra.gmra.mrb[4].mxu0 %vm588_vm2, %v911_v29 }
 0x62e   : > { %1579 = vmatprep.mubr.msk.f32.mxu0 %vm1995_vm1, %v1994_v36 }
 0x648   : > { %v1028_v31 = vpop.xlane.xlu0 %1027 }
 0x649   : > { %v1032_v32 = vmul.f32 0.03125, %v1028_v31 }
 0x64b   : > { %v1034_v33 = vadd.f32 1e-05, %v1032_v32 }
 0x64c   : > { %v1031_v34 = vpop.xlane.xlu1 %1030  ;;  %v1046_v40 = vpop.permute.xlu0 %1045 }
 0x64d   : > { %1732 = vrsqrt.f32 %v1034_v33  ;;  %v1033_v35 = vmul.f32 0.03125, %v1031_v34 }
 0x64f   : > { %v1035_v37 = vadd.f32 1e-05, %v1033_v35 }
 0x650   : > { %v1056_v43 = vpop.permute.xlu1 %1055 }
 0x651   : > { %1734 = vrsqrt.f32 %v1035_v37 }
 0x657   : > { %v1733_v38 = vpop.eup %1732 }
 0x658   : > { %v1038_v42 = vmul.f32 %v1733_v38, %v1014_v6  ;;  %v1609_v6 = vpack.c.bf16 %v1228_v5, %v1227_v4 }
 0x65a   : > { %v1048_v44 = vmul.f32 %v1046_v40, %v1038_v42 }
 0x65b   : > { %v1735_v45 = vpop.eup %1734 }
 0x65c   : > { %v1039_v46 = vmul.f32 %v1735_v45, %v1015_v7  ;;  %v1058_v47 = vadd.f32 %v1056_v43, %v1048_v44 }
 0x65e   : > { %v1049_v48 = vmul.f32 %v1046_v40, %v1039_v46  ;;  %1063 = vrot.lane.b32.xlu0 %v1058_v47, %s1997_s24 }
 0x660   : > { %v1059_v36 = vadd.f32 %v1056_v43, %v1049_v48 }
 0x662   : > { %1140 = vrot.lane.b32.xlu1 %v1059_v36, %s1997_s24 }
 0x6d0   : > { %v1064_v50 = vpop.permute.xlu0 %1063 }
 0x6d1   : > { %1573 = vmatpush3.msra.mxu1 %v1064_v50 }
 0x6d2   : > { %1575 = vmatmul.mubr.msk.f32.vlgmr.msra.gmra.mrb[6].mxu1 %vm740_vm3, %v1060_v49  ;;  %1606 = vmatprep.subr.bf16.mxu1 %v1605_v57 }
 0x6d3   : > { %1608 = vmatpush3.bf16.msra.mxu1 %v1605_v57 }
 0x6d4   : > { %v1141_v51 = vpop.permute.xlu1 %1140  ;;  %1610 = vmatprep.subr.bf16.mxu1 %v1609_v6 }
 0x6d5   : > { %1578 = vmatpush3.msra.mxu0 %v1141_v51 }
 0x6d6   : > { %1580 = vmatmul.mubr.msk.f32.vlgmr.msra.gmra.mrb[6].mxu0 %vm740_vm3, %v1060_v49 }
 0x6d7   : > { %1612 = vmatpush3.bf16.msra.mxu1 %v1609_v6 }
 0x700   : > { %v1571_v52 = vpop.f32.mrb[4].mxu0 }
 0x701   : > { %v989_v53 = vpop.f32.mrb[5].mxu0 }
 0x7a5   : > { %v1135_v58 = vpop.f32.mrb[6].mxu1 }
 0x7a6   : > { %v1136_v59 = vadd.f32 %v1135_v58, %v1061_v54  ;;  %v1576_v60 = vpop.f32.mrb[7].mxu1 }
 0x7a8   : > { %v1213_v61 = vadd.f32 %v1136_v59, %v989_v53 }
 0x7a9   : > { %v1209_v62 = vpop.f32.mrb[6].mxu0 }
 0x7aa   : > { %v1210_v63 = vadd.f32 %v1209_v62, %v1061_v54  ;;  %1217 = vrot.lane.b32.xlu0 %v1213_v61, %s1997_s24  ;;  %v1581_v2 = vpop.f32.mrb[7].mxu0 }
 0x7ac   : > { %v1214_v3 = vadd.f32 %v1571_v52, %v1210_v63 }
 0x7ae   : > { %1219 = vrot.lane.b32.xlu1 %v1214_v3, %s1997_s24  ;;  %s1339_s24 = sshll.u32 %s446_s10, 4  ;;  %s2428_s24 = int_to_ptr.vmem [resolvable:$true] %s1339_s24 }
 0x7af   : > { %s1906_s27 = scalar_lea.vmem %s2428_s24, 256  ;;  %p1913_p1 = scmp.lt.s32.totalorder %s2428_s24, %s1911_s23 }
 0x7b0   : > { %p1907_p7 = scmp.ne.s32.totalorder %s2428_s24, %s1906_s27  ;;  %p1914_p3 = scmp.lt.s32.totalorder %s1912_s20, %s1906_s27 }
 0x7b2   : > { %p1908_p12 = pnand %p1907_p7, %p2516_p4  ;;  %p1915_p2 = por %p1914_p3, %p1913_p1 }
 0x7b4   : > { %p1909_p13 = pneg %p1908_p12 }
 0x7b6   : > { %p1916_p8 = pnand %p1915_p2, %p1909_p13 }
 0x81c   : > { %v1218_v7 = vpop.permute.xlu0 %1217 }
 0x81d   : > { %v1223_v8 = vmul.f32 %v1218_v7, %v2352_v41 }
 0x81f   : > { %1238 = vrot.lane.b32.xlu0 %v1223_v8, %s1999_s18 }
 0x820   : > { %v1220_v9 = vpop.permute.xlu1 %1219 }
 0x821   : > { %v1224_v10 = vmul.f32 %v1220_v9, %v2350_v39 }
 0x823   : > { %1240 = vrot.lane.b32.xlu1 %v1224_v10, %s1999_s18 }
 0x891   : > { %v1239_v11 = vpop.permute.xlu0 %1238 }
 0x892   : > { %1590 = vmatprep.mubr.msk.f32.mxu1 %vm453_vm0, %v1239_v11 }
 0x895   : > { %v1241_v12 = vpop.permute.xlu1 %1240 }
 0x896   : > { %1591 = vmatmul.mubr.msk.f32.vlgmr.msra.gmra.mrb[8].mxu1 %vm453_vm0, %v1241_v12 }
 0x969   : > { %v1592_v14 = vpop.f32.mrb[8].mxu1 }
 0x96a   : > { %v1318_v39 = vadd.f32 %v1592_v14, %v1496_v13  ;;  %v1312_v41 = vpop.f32.mrb[9].mxu1 }
 0x96b   : > { %v1313_v15 = vadd.f32 %v1496_v13, %v1312_v41 }
 0x96c   : > { %v1322_v16 = vadd.f32 %v1318_v39, %v2326_v1 }
 0x96d   : > { %v1321_v17 = vadd.f32 %v1313_v15, %v2324_v0 }
 0x96e   : > { %1324 = vst.msk [vmem:[%s446_s10 + $0x8] sm:$0xff] %vm453_vm0, %v1322_v16 }
 0x96f   : > { %1323 = vst.msk [vmem:[%s446_s10] sm:$0xff] %vm453_vm0, %v1321_v17 }
 0x970   : > { %1919 = shalt.err (!%p1916_p8)
}
 0x971   : > { %s1920_s26 = scalar_lea.hbm %s2426_s2, 256  ;;  %s1924_s10 = scalar_lea.hbm %s2515_s25, 512 }
 0x972   : > { %p1921_p6 = scmp.ne.s32.totalorder %s2426_s2, %s1920_s26  ;;  %p1925_p0 = scmp.lt.u32.totalorder %s2426_s2, %s2515_s25 }
 0x973   : > { %p1926_p5 = scmp.lt.u32.totalorder %s1924_s10, %s1920_s26  ;;  %p1928_p7 = scmp.lt.u32.totalorder %s1920_s26, %s2426_s2 }
 0x974   : > { %p1922_p10 = pnand %p1921_p6, %p2516_p4 }
 0x975   : > { %p1927_p9 = por %p1926_p5, %p1925_p0 }
 0x976   : > { %p1923_p11 = pneg %p1922_p10 }
 0x977   : > { %p1929_p12 = por %p1928_p7, %p1927_p9 }
 0x979   : > { %p1930_p13 = pnand %p1929_p12, %p1923_p11 }
 0x97b   : > { %1933 = shalt.err (!%p1930_p13)
}
 0x97c   : > { %s2001_s27 = smov 128   ;;  %s2002_s17 = smov 8  }
 0x97d   : > { %1635 = dma.vmem_to_hbm [thread:$0]  (%p2516_p4), %s2428_s24, 256, %s2426_s2, %s1326_s19, %s2001_s27, %s2001_s27, %s2002_s17  }
 0x97e PF: > { %s1354_s23 = sand.u32 1, %s1972_s13   ;;  %p2517_p1 = scmp.ne.s32.totalorder %s2504_s21, 0 }
 0x97f   : > { %p2518_p3 = scmp.ge.s32.totalorder %s1984_s16, 2  ;;  %s1355_s20 = scalar_lea.sflag [#allocation4], %s1354_s23 }
 0x981   : > { %p1658_p2 = pnand %p2518_p3, %p2517_p1 }
 0x983   : > { %1967 = dma.done.wait (!%p1658_p2), %s1355_s20, 256  }
 0x984   : > { %1969 = vsyncadd (!%p1658_p2), %s1355_s20, 4294967040  ;;  %p26_p8 = scmp.ge.s32.totalorder %s2226_s11, 4   ;;  %s2519_s13 = smov %s1976_s14 }
 0x985   : > { %s2520_s14 = smov %s1980_s15  ;;  %s2521_s15 = smov %s2238_s29 }
 0x986   : > { %s2522_s16 = smov %s2226_s11  ;;  %28 = sbr.rel (!%p26_p8) target bundleno = 12 (0xc), region = 125 }
 0x98d   :  { %1360 = vsyncpa [#allocation3], 1 }
 0x98e   :  { %1362 = vsyncpa [#allocation3 + $0x1], 1 }
 0x98f   :  { %1363 = vsyncpa [#allocation6], 1 }
 0x990   :  { %1364 = vsyncpa [#allocation9], 1 }
 0x991   :  { %1365 = vsyncpa [#allocation12], 1 }
 0x992   :  { %1366 = vsyncpa [#allocation4], 1 }
 0x993   :  { %1368 = vsyncpa [#allocation4 + $0x1], 1 }

</bundles_post_ra>
